<compile_context>
chip_gen: v6e
topology: v6e:2x2x1
jax: 0.10.0
libtpu: 0.0.40
codegen_flags: <defaults>
</compile_context>

<pallas_src>
import functools

import jax
import jax.numpy as jnp
from jax import lax
from jax.experimental import pallas as pl
from jax.experimental.pallas import tpu as pltpu


def _round_up(x: int, m: int) -> int:
    return ((x + m - 1) // m) * m


def _cdiv(a: int, b: int) -> int:
    return -(-a // b)


def _plan_axis(dim: int, align: int, max_tile: int, min_blocks: int = 1):
    """Split `dim` into equal tiles.

    Returns (padded_dim, tile, n_blocks).  If a single block suffices the tile
    is the raw dim itself (a block equal to the full array dim is always legal,
    even if unaligned), so no wrapper-side padding is needed.  When the axis
    must be split, tiles are `align`-aligned and padding is minimal
    (< align * n_blocks), not rounded up to the tile size.
    """
    aligned = _round_up(max(dim, 1), align)
    n_blocks = max(min_blocks, _cdiv(aligned, max_tile))
    if n_blocks == 1:
        return dim, dim, 1
    tile = _round_up(_cdiv(aligned, n_blocks), align)
    return tile * n_blocks, tile, n_blocks


def _fc_kernel_f32(x_ref, w_ref, b_ref, o_ref):
    """f32 output: accumulate directly into the resident output block.

    x_ref: [tm, tk]  activations
    w_ref: [tn, tk]  weights in PyTorch [D_out, D_in] layout (no transpose)
    b_ref: [1,  tn]  bias for this N block
    o_ref: [tm, tn]  f32 output block, resident across the K grid axis
    """
    k = pl.program_id(2)
    part = lax.dot_general(
        x_ref[...],
        w_ref[...],
        dimension_numbers=(((1,), (1,)), ((), ())),  # x @ w.T on the MXU
        preferred_element_type=jnp.float32,
    )

    @pl.when(k == 0)
    def _init():
        o_ref[...] = part + b_ref[...].astype(jnp.float32)

    @pl.when(k > 0)
    def _accum():
        o_ref[...] += part


def _fc_kernel_acc(x_ref, w_ref, b_ref, o_ref, acc_ref):
    """Low-precision output: f32 VMEM accumulator, cast out on the last k step."""
    k = pl.program_id(2)
    part = lax.dot_general(
        x_ref[...],
        w_ref[...],
        dimension_numbers=(((1,), (1,)), ((), ())),
        preferred_element_type=jnp.float32,
    )

    @pl.when(k == 0)
    def _init():
        acc_ref[...] = part + b_ref[...].astype(jnp.float32)

    @pl.when(k > 0)
    def _accum():
        acc_ref[...] += part

    @pl.when(k == pl.num_programs(2) - 1)
    def _finalize():
        o_ref[...] = acc_ref[...].astype(o_ref.dtype)


@functools.partial(jax.jit, static_argnames=("tm_max", "tn_max", "tk_max"))
def fc_layer(x, weight, bias, *, tm_max=512, tn_max=512, tk_max=1024):
    """nn.Linear forward: x:[B, D_in], weight:[D_out, D_in], bias:[D_out]."""
    B, D_in = x.shape
    D_out, D_in_w = weight.shape
    assert D_in == D_in_w, "weight / input dim mismatch"

    itemsize = jnp.dtype(x.dtype).itemsize
    # Sublane alignment depends on packing: 8 for 4-byte, 16 for 2-byte, 32 for 1-byte.
    sub = {4: 8, 2: 16, 1: 32}.get(itemsize, 8)

    Mp, tm, gm = _plan_axis(B, sub, tm_max)
    Np, tn, gn = _plan_axis(D_out, 128, tn_max)
    Kp, tk, gk = _plan_axis(D_in, 128, tk_max)

    # v7x megacore: give the parallel (M, N) grid at least 2 programs so both
    # TensorCores get work.  Prefer splitting M (cheap: sublane-only alignment).
    if gm * gn < 2:
        if _round_up(B, sub) >= 2 * sub:
            Mp, tm, gm = _plan_axis(B, sub, tm_max, min_blocks=2)
        elif _round_up(D_out, 128) >= 2 * 128:
            Np, tn, gn = _plan_axis(D_out, 128, tn_max, min_blocks=2)

    # Minimal wrapper-side padding (none at all when an axis is one full block).
    if (Mp, Kp) != (B, D_in):
        x = jnp.pad(x, ((0, Mp - B), (0, Kp - D_in)))
    if (Np, Kp) != (D_out, D_in):
        # TODO(synk): for a fixed layer, pre-pad/lay out the weight once outside
        # the per-call hot path to avoid this HBM copy on unaligned dims.
        weight = jnp.pad(weight, ((0, Np - D_out), (0, Kp - D_in)))
    b2 = bias if Np == D_out else jnp.pad(bias, (0, Np - D_out))
    b2 = b2.reshape(1, Np)

    out_dtype = x.dtype
    use_acc_scratch = out_dtype != jnp.float32
    kernel = _fc_kernel_acc if use_acc_scratch else _fc_kernel_f32
    scratch = [pltpu.VMEM((tm, tn), jnp.float32)] if use_acc_scratch else []

    grid = (gm, gn, gk)

    bias_bytes = b2.size * b2.dtype.itemsize
    cost = pl.CostEstimate(
        flops=2 * Mp * Kp * Np,
        transcendentals=0,
        bytes_accessed=(Mp * Kp + Np * Kp) * itemsize
        + bias_bytes
        + Mp * Np * jnp.dtype(out_dtype).itemsize,
    )

    out = pl.pallas_call(
        kernel,
        out_shape=jax.ShapeDtypeStruct((Mp, Np), out_dtype),
        grid_spec=pltpu.PrefetchScalarGridSpec(
            num_scalar_prefetch=0,
            grid=grid,
            in_specs=[
                pl.BlockSpec((tm, tk), lambda i, j, k: (i, k)),   # x
                pl.BlockSpec((tn, tk), lambda i, j, k: (j, k)),   # weight (no T)
                pl.BlockSpec((1, tn), lambda i, j, k: (0, j)),    # bias
            ],
            out_specs=pl.BlockSpec((tm, tn), lambda i, j, k: (i, j)),
            scratch_shapes=scratch,
        ),
        compiler_params=pltpu.CompilerParams(
            dimension_semantics=("parallel", "parallel", "arbitrary"),
            # ~11 MiB worst-case working set at 512x512x1024 f32 (double-buffered
            # inputs + output + optional acc); 32 MiB raises v5e's 16 MiB scoped
            # default and stays inside v7x's 64 MiB physical VMEM.
            vmem_limit_bytes=32 * 1024 * 1024,
        ),
        cost_estimate=cost,
    )(x, weight, b2)

    if (Mp, Np) != (B, D_out):
        out = out[:B, :D_out]
    return out


if __name__ == "__main__":
    key = jax.random.PRNGKey(0)

    def run_case(batch, input_dim, output_dim, case_key, dtype=jnp.float32,
                 tol=1e-4, **tile_caps):
        kx, kw, kb = jax.random.split(case_key, 3)
        bound = 1.0 / (input_dim ** 0.5)
        weight = jax.random.uniform(
            kw, (output_dim, input_dim), jnp.float32, -bound, bound
        ).astype(dtype)
        bias = jax.random.uniform(
            kb, (output_dim,), jnp.float32, -bound, bound
        ).astype(dtype)
        x = jax.random.normal(kx, (batch, input_dim), jnp.float32).astype(dtype)

        out = jax.block_until_ready(fc_layer(x, weight, bias, **tile_caps))

        ref = (
            x.astype(jnp.float32) @ weight.astype(jnp.float32).T
            + bias.astype(jnp.float32)
        ).astype(dtype)
        assert out.shape == (batch, output_dim)
        err = jnp.max(jnp.abs(out.astype(jnp.float32) - ref.astype(jnp.float32)))
        assert jnp.allclose(
            out.astype(jnp.float32), ref.astype(jnp.float32), atol=tol, rtol=tol
        ), f"mismatch at shape {(batch, input_dim, output_dim)}: max err {err}"

    k1, k2, k3 = jax.random.split(key, 3)

    # Small shapes consistent with FcLayer(input_dim=32, output_dim=16):
    # single full-dim blocks, zero padding.
    run_case(8, 32, 16, k1)
    # Larger shape: single K/N blocks (no padding at all), M split for megacore.
    run_case(160, 640, 320, k2)
    # Same shape with small tile caps to exercise multi-block K accumulation,
    # alignment-only padding and the trailing remainder slice.
    run_case(160, 640, 320, k3, tm_max=64, tn_max=128, tk_max=256)
    # bf16 path: exercises the f32-accumulator-scratch kernel and 16-row sublane
    # alignment (looser tolerance for bf16 output rounding).
    run_case(8, 32, 16, k1, dtype=jnp.bfloat16, tol=5e-2)

    print("KERNEL_OK")
</pallas_src>

<mosaic_0001>
module attributes {stable_mosaic.version = 11 : i64} {
  func.func @_fc_kernel_f32(%arg0: i32, %arg1: i32, %arg2: i32, %arg3: memref<8x32xf32, #tpu.memory_space<vmem>>, %arg4: memref<16x32xf32, #tpu.memory_space<vmem>>, %arg5: memref<1x16xf32, #tpu.memory_space<vmem>>, %arg6: memref<8x16xf32, #tpu.memory_space<vmem>>) attributes {dimension_semantics = [#tpu.dimension_semantics<parallel>, #tpu.dimension_semantics<parallel>, #tpu.dimension_semantics<arbitrary>], iteration_bounds = array<i64: 1, 1, 1>, scalar_prefetch = 0 : i64, scratch_operands = 0 : i64, tpu.core_type = #tpu.core_type<tc>, window_params = [{transform_indices = @transform_0, window_bounds = array<i64: 8, 32>}, {transform_indices = @transform_1, window_bounds = array<i64: 16, 32>}, {transform_indices = @transform_2, window_bounds = array<i64: 1, 16>}, {transform_indices = @transform_3, window_bounds = array<i64: 8, 16>}]} {
    %c0 = arith.constant 0 : index
    %c0_0 = arith.constant 0 : index
    %0 = vector.load %arg3[%c0, %c0_0] : memref<8x32xf32, #tpu.memory_space<vmem>>, vector<8x32xf32>
    %c0_1 = arith.constant 0 : index
    %c0_2 = arith.constant 0 : index
    %1 = vector.load %arg4[%c0_1, %c0_2] : memref<16x32xf32, #tpu.memory_space<vmem>>, vector<16x32xf32>
    %cst = arith.constant dense<0.000000e+00> : vector<8x16xf32>
    %2 = tpu.matmul %0, %1, %cst {dimension_numbers = #tpu.dot_dimension_numbers<[1], [1], [0], [0], [0, 0, 1, 0], [], []>} : vector<8x32xf32>, vector<16x32xf32>, vector<8x16xf32> -> vector<8x16xf32>
    %c0_i32 = arith.constant 0 : i32
    %3 = arith.cmpi eq, %arg2, %c0_i32 : i32
    %4 = arith.extui %3 : i1 to i32
    %c0_i32_3 = arith.constant 0 : i32
    %5 = arith.cmpi ne, %4, %c0_i32_3 : i32
    scf.if %5 {
      %c0_6 = arith.constant 0 : index
      %c0_7 = arith.constant 0 : index
      %9 = vector.load %arg5[%c0_6, %c0_7] : memref<1x16xf32, #tpu.memory_space<vmem>>, vector<1x16xf32>
      %10 = vector.broadcast %9 : vector<1x16xf32> to vector<8x16xf32>
      %11 = arith.addf %2, %10 : vector<8x16xf32>
      %c0_8 = arith.constant 0 : index
      %c0_9 = arith.constant 0 : index
      %12 = vector.load %arg6[%c0_8, %c0_9] : memref<8x16xf32, #tpu.memory_space<vmem>>, vector<8x16xf32>
      tpu.vector_store %arg6[%c0_8, %c0_9], %11 {strides = array<i32>} : memref<8x16xf32, #tpu.memory_space<vmem>>, vector<8x16xf32>,
    } else {
    }
    %c0_i32_4 = arith.constant 0 : i32
    %6 = arith.cmpi sgt, %arg2, %c0_i32_4 : i32
    %7 = arith.extui %6 : i1 to i32
    %c0_i32_5 = arith.constant 0 : i32
    %8 = arith.cmpi ne, %7, %c0_i32_5 : i32
    scf.if %8 {
      %c0_6 = arith.constant 0 : index
      %c0_7 = arith.constant 0 : index
      %9 = vector.load %arg6[%c0_6, %c0_7] : memref<8x16xf32, #tpu.memory_space<vmem>>, vector<8x16xf32>
      %10 = arith.addf %9, %2 : vector<8x16xf32>
      %c0_8 = arith.constant 0 : index
      %c0_9 = arith.constant 0 : index
      %11 = vector.load %arg6[%c0_8, %c0_9] : memref<8x16xf32, #tpu.memory_space<vmem>>, vector<8x16xf32>
      tpu.vector_store %arg6[%c0_8, %c0_9], %10 {strides = array<i32>} : memref<8x16xf32, #tpu.memory_space<vmem>>, vector<8x16xf32>,
    } else {
    }
    return
  }
  func.func @transform_0(%arg0: i32, %arg1: i32, %arg2: i32) -> (i32, i32) {
    %c0_i32 = arith.constant 0 : i32
    return %arg0, %arg2 : i32, i32
  }
  func.func @transform_1(%arg0: i32, %arg1: i32, %arg2: i32) -> (i32, i32) {
    %c0_i32 = arith.constant 0 : i32
    return %arg1, %arg2 : i32, i32
  }
  func.func @transform_2(%arg0: i32, %arg1: i32, %arg2: i32) -> (i32, i32) {
    %c0_i32 = arith.constant 0 : i32
    %c0_i32_0 = arith.constant 0 : i32
    return %c0_i32, %arg1 : i32, i32
  }
  func.func @transform_3(%arg0: i32, %arg1: i32, %arg2: i32) -> (i32, i32) {
    %c0_i32 = arith.constant 0 : i32
    return %arg0, %arg1 : i32, i32
  }
}

</mosaic_0001>

<bundles_post_ra>
// kernel: fc_layer.1
= control target key start
LH: loop header
LB: loop body
LE: loop exit
PB: predicated region body
PF: predicated region fallthrough
CT: control target
= control target key end

     0   :  { %8 = vsyncpa [#allocation3], 0  ;;  %s288_s0 = inlined_call_operand.hbm [shape: f32[8,32], index: 0, kind: input, shape index: {}]   ;;  %s289_s1 = inlined_call_operand.hbm [shape: f32[16,32], index: 1, kind: input, shape index: {}]   ;;  %s290_s2 = inlined_call_operand.vmem [shape: f32[1,16], index: 2, kind: input, shape index: {}]   ;;  %s291_s3 = inlined_call_operand.hbm [shape: f32[8,16], index: 3, kind: output, shape index: {}]  }
   0x1   :  { %9 = vsyncpa [#allocation6], 0 }
   0x2   :  { %10 = vsyncpa [#allocation4], 0  ;;  %s249_s12 = smov [#allocation2]   ;;  %s250_s14 = smov [#allocation5]  }
   0x3   :  { %s17_s13 = sshll.u32 %s249_s12, 4  ;;  %s26_s15 = sshll.u32 %s250_s14, 4  ;;  %s18_s13 = int_to_ptr.vmem [resolvable:$true] %s17_s13  ;;  %s27_s15 = int_to_ptr.vmem [resolvable:$true] %s26_s15 }
   0x4   :  { %s191_s16 = scalar_lea.vmem %s18_s13, 128  ;;  %p196_p1 = scmp.lt.s32.totalorder %s18_s13, %s18_s13 }
   0x5   :  { %p192_p0 = scmp.ne.s32.totalorder %s18_s13, %s191_s16  ;;  %p197_p2 = scmp.lt.s32.totalorder %s191_s16, %s191_s16 }
   0x7   :  { %p198_p3 = por %p197_p2, %p196_p1 }
   0x9   :  { %p199_p4 = pnand %p198_p3, %p192_p0 }
   0xb   :  { %202 = shalt.err (!%p199_p4)
}
   0xc   :  { %20 = dma.hbm_to_vmem [thread:$0]  %s288_s0, 128, %s18_s13, [#allocation3]  }
   0xd   :  { %s211_s19 = scalar_lea.vmem %s27_s15, 256  ;;  %p216_p6 = scmp.lt.s32.totalorder %s27_s15, %s27_s15 }
   0xe   :  { %p212_p5 = scmp.ne.s32.totalorder %s27_s15, %s211_s19  ;;  %p217_p7 = scmp.lt.s32.totalorder %s211_s19, %s211_s19 }
  0x10   :  { %p218_p8 = por %p217_p7, %p216_p6 }
  0x12   :  { %p219_p9 = pnand %p218_p8, %p212_p5 }
  0x14   :  { %222 = shalt.err (!%p219_p9)
}
  0x15   :  { %s251_s20 = smov 128   ;;  %s252_s21 = smov 8  }
  0x16   :  { %32 = dma.hbm_to_vmem [thread:$0]  %s289_s1, 256, %s27_s15, [#allocation6], %s251_s20, %s251_s20, %s252_s21  }
  0x17   :  { %243 = dma.done.wait [#allocation3], 128  }
  0x18   :  { %244 = vsyncadd [#allocation3], 4294967168 }
  0x19   :  { %245 = dma.done.wait [#allocation6], 256  }
  0x1a   :  { %246 = vsyncadd [#allocation6], 4294967040  ;;  %v253_v0 = vmov 0.0   ;;  %vm254_vm0 = vmmov 0   ;;  %vm44_vm1 = vcmask 261120   ;;  %v43_v1 = vld [vmem:[#allocation5 + $0x8] sm:$0xff] }
  0x1b   :  { %169 = vmatprep.subr.mxu0 %v253_v0  ;;  %173 = vmatprep.mubr.msk.f32.mxu0 %vm254_vm0, %v253_v0  ;;  %v42_v2 = vld [vmem:[#allocation5] sm:$0xff]  ;;  %v41_v3 = vld [vmem:[#allocation2] sm:$0xff]  ;;  %s255_s1 = smov [#allocation7]   ;;  %vm136_vm2 = vcmask 130048  }
  0x1c   :  { %170 = vmatpush3.xpose.msk.msra.mxu0 %vm44_vm1, %v43_v1  ;;  %v165_v4 = vld [vmem:[%s290_s2] ss:$0 sm:$0xff]  ;;  %s152_s25 = sshll.u32 %s255_s1, 4  ;;  %s153_s25 = int_to_ptr.vmem [resolvable:$true] %s152_s25 }
  0x1d   :  { %171 = vmatprep.subr.mxu0 %v253_v0  ;;  %s223_s26 = scalar_lea.vmem %s153_s25, 128  ;;  %p228_p11 = scmp.lt.s32.totalorder %s153_s25, %s153_s25 }
  0x1e   :  { %p224_p10 = scmp.ne.s32.totalorder %s153_s25, %s223_s26  ;;  %p229_p12 = scmp.lt.s32.totalorder %s223_s26, %s223_s26 }
  0x20   :  { %172 = vmatpush3.xpose.msk.msra.mxu0 %vm44_vm1, %v42_v2  ;;  %p230_p13 = por %p229_p12, %p228_p11 }
  0x22   :  { %p231_p0 = pnand %p230_p13, %p224_p10 }
  0x23   :  { %174 = vmatmul.mubr.msk.f32.vlgmr.msra.gmra.mxu0 %vm44_vm1, %v41_v3 }
  0xe3   :  { %v120_v5 = vpop.f32.mrf.mxu0 }
  0xe4   :  { %v135_v6 = vadd.f32 %v165_v4, %v120_v5 }
  0xe5   :  { %v175_v7 = vpop.f32.mrf.mxu0 }
  0xe6   :  { %137 = vst.msk [vmem:[#allocation7] sm:$0xff] %vm136_vm2, %v135_v6 }
  0xe7   :  { %234 = shalt.err (!%p231_p0)
}
  0xe8   :  { %155 = dma.vmem_to_hbm [thread:$0]  %s153_s25, 128, %s291_s3, [#allocation4]  }
  0xe9   :  { %247 = dma.done.wait [#allocation4], 128  }
  0xea   :  { %248 = vsyncadd [#allocation4], 4294967168 }
  0xeb   :  { %159 = vsyncpa [#allocation3], 1 }
  0xec   :  { %160 = vsyncpa [#allocation6], 1 }
  0xed   :  { %161 = vsyncpa [#allocation4], 1 }

</bundles_post_ra>
